<compile_context>
chip_gen: v6e
topology: v6e:2x2x1
jax: 0.10.0
libtpu: 0.0.40
codegen_flags: <defaults>
</compile_context>

<pallas_src>
import jax
import jax.numpy as jnp
from jax.experimental import pallas as pl
from jax.experimental.pallas import tpu as pltpu

BN_EPS = 1e-5
LANE = 128
SUBLANE = 8
VMEM_BUDGET_BYTES = 20 << 20   # conservative: fits default scoped VMEM on v5e/v6e/v7x
VMEM_LIMIT_BYTES = 32 << 20


def _round_up(n, m):
    return (n + m - 1) // m * m


def resnet_block_kernel(x_ref, w1_ref, b1_ref, w2_ref, b2_ref, o_ref):
    # BatchNorm already folded into (w1, b1); dropout / noise are identity in eval mode.
    x = x_ref[...].astype(jnp.bfloat16)                     # cast only at the dot boundary
    h = jnp.dot(x, w1_ref[...], preferred_element_type=jnp.float32) + b1_ref[...]
    h = jnp.maximum(h, 0.0).astype(jnp.bfloat16)            # ReLU in f32, cast for 2nd dot
    out = jnp.dot(h, w2_ref[...], preferred_element_type=jnp.float32) + b2_ref[...]
    o_ref[...] = out.astype(o_ref.dtype)


def _pick_block_b(B, n_in_p, hid_p, n_out_p, budget=VMEM_BUDGET_BYTES):
    """Largest batch tile (multiple of 8) whose double-buffered footprint fits VMEM."""
    padded_b = _round_up(B, SUBLANE)
    # Weights / biases: constant index_map but still double-buffered by the default pipeline.
    static_bytes = (2 * (n_in_p * hid_p + hid_p * n_out_p) * 2   # bf16 weights x2 buffers
                    + 2 * (hid_p + n_out_p) * 4)                 # f32 biases x2 buffers
    block_b = SUBLANE
    for cand in (1024, 512, 256, 128, 64, 32, 16, 8):
        if cand > padded_b:
            continue
        act_bytes = (2 * cand * n_in_p * 4            # x tiles (double-buffered, f32)
                     + 2 * cand * n_out_p * 4         # out tiles (double-buffered, f32)
                     + cand * hid_p * (4 + 2)         # h in f32 + bf16 copy
                     + cand * (n_in_p + n_out_p) * 2)  # bf16 casts on the dot path
        if static_bytes + act_bytes <= budget:
            block_b = cand
            break
    # Keep >= 2 grid steps when the batch allows it (v7x has 2 TensorCores).
    if padded_b >= 2 * SUBLANE and block_b >= padded_b:
        block_b = _round_up(pl.cdiv(padded_b, 2), SUBLANE)
    return block_b


@jax.jit
def resnet_block_forward(x, gamma, beta, running_mean, running_var, w1, b1, w2, b2):
    B, n_in = x.shape
    hid = w1.shape[1]
    n_out = w2.shape[1]

    # ---- Host-side packing (free layout plumbing, fused by XLA) -------------
    # Fold eval-mode BatchNorm into dense1:  BN(x) = x*scale + shift
    scale = gamma.astype(jnp.float32) * jax.lax.rsqrt(running_var.astype(jnp.float32) + BN_EPS)
    shift = beta.astype(jnp.float32) - running_mean.astype(jnp.float32) * scale
    w1_f32 = w1.astype(jnp.float32)
    w1f = w1_f32 * scale[:, None]                    # [n_in, hid]
    b1f = b1.astype(jnp.float32) + shift @ w1_f32    # [hid]

    # Pad feature dims to lane multiples (lane-dense MXU tiles and output stores),
    # and the batch to the chosen tile (handles ragged B without asserting).
    n_in_p = _round_up(n_in, LANE)
    hid_p = _round_up(hid, LANE)
    n_out_p = _round_up(n_out, LANE)
    block_b = _pick_block_b(B, n_in_p, hid_p, n_out_p)
    B_p = _round_up(B, block_b)

    x_p = jnp.zeros((B_p, n_in_p), jnp.float32).at[:B, :n_in].set(x.astype(jnp.float32))
    w1_p = jnp.zeros((n_in_p, hid_p), jnp.bfloat16).at[:n_in, :hid].set(w1f.astype(jnp.bfloat16))
    b1_p = jnp.zeros((1, hid_p), jnp.float32).at[:, :hid].set(b1f[None, :])
    w2_p = jnp.zeros((hid_p, n_out_p), jnp.bfloat16).at[:hid, :n_out].set(w2.astype(jnp.bfloat16))
    b2_p = jnp.zeros((1, n_out_p), jnp.float32).at[:, :n_out].set(b2.astype(jnp.float32)[None, :])

    grid = (B_p // block_b,)
    rep = lambda shape: pl.BlockSpec(shape, lambda i: (0, 0))   # weights resident across grid

    out_p = pl.pallas_call(
        resnet_block_kernel,
        out_shape=jax.ShapeDtypeStruct((B_p, n_out_p), x.dtype),
        grid_spec=pltpu.PrefetchScalarGridSpec(
            num_scalar_prefetch=0,
            grid=grid,
            in_specs=[
                pl.BlockSpec((block_b, n_in_p), lambda i: (i, 0)),  # x (batch-tiled)
                rep((n_in_p, hid_p)),    # W1 (BN folded, bf16)
                rep((1, hid_p)),         # b1 (f32)
                rep((hid_p, n_out_p)),   # W2 (bf16)
                rep((1, n_out_p)),       # b2 (f32)
            ],
            out_specs=pl.BlockSpec((block_b, n_out_p), lambda i: (i, 0)),
        ),
        compiler_params=pltpu.CompilerParams(
            dimension_semantics=("parallel",),
            vmem_limit_bytes=VMEM_LIMIT_BYTES),
    )(x_p, w1_p, b1_p, w2_p, b2_p)

    return out_p[:B, :n_out]


def init_params(key, n_in, hid_factor, n_out, dtype=jnp.float32):
    """Deterministic parameter init matching PyTorch module shapes."""
    hid = int(hid_factor * n_in)
    k1, k2, k3, k4 = jax.random.split(key, 4)

    # nn.Linear default init: U(-1/sqrt(fan_in), 1/sqrt(fan_in)); weights kept as (in, out).
    lim1 = 1.0 / jnp.sqrt(n_in)
    w1 = jax.random.uniform(k1, (n_in, hid), dtype, -lim1, lim1)
    b1 = jax.random.uniform(k2, (hid,), dtype, -lim1, lim1)
    lim2 = 1.0 / jnp.sqrt(hid)
    w2 = jax.random.uniform(k3, (hid, n_out), dtype, -lim2, lim2)
    b2 = jax.random.uniform(k4, (n_out,), dtype, -lim2, lim2)

    # BatchNorm1d default init
    gamma = jnp.ones((n_in,), dtype)
    beta = jnp.zeros((n_in,), dtype)
    running_mean = jnp.zeros((n_in,), dtype)
    running_var = jnp.ones((n_in,), dtype)
    return gamma, beta, running_mean, running_var, w1, b1, w2, b2


def reference_forward(x, gamma, beta, rm, rv, w1, b1, w2, b2):
    xn = (x - rm) / jnp.sqrt(rv + BN_EPS) * gamma + beta
    h = jnp.maximum(xn @ w1 + b1, 0.0)
    return h @ w2 + b2


if __name__ == "__main__":
    # Small shapes consistent with the module: batch=16, n_in=32, hid_factor=2, n_out=16
    B, n_in, hid_factor, n_out = 16, 32, 2.0, 16
    key = jax.random.PRNGKey(0)
    kx, kp = jax.random.split(key)

    x = jax.random.normal(kx, (B, n_in), jnp.float32)
    params = init_params(kp, n_in, hid_factor, n_out)

    out = resnet_block_forward(x, *params)
    out = jax.block_until_ready(out)

    ref = reference_forward(x, *params)
    assert out.shape == (B, n_out)
    # bf16 MXU inputs (f32 accumulation) -> small deviation from the all-f32 reference.
    err = float(jnp.max(jnp.abs(out - ref)))
    assert jnp.allclose(out, ref, atol=2e-2, rtol=2e-2), f"max abs err {err}"

    # TODO(synk): training-mode Dropout / GaussianNoise (stochastic) not implemented;
    # kernel reproduces eval-mode forward semantics.
    print("KERNEL_OK")
</pallas_src>

<mosaic_0001>
module attributes {stable_mosaic.version = 11 : i64} {
  func.func @resnet_block_kernel(%arg0: i32, %arg1: memref<8x128xf32, #tpu.memory_space<vmem>>, %arg2: memref<128x128xbf16, #tpu.memory_space<vmem>>, %arg3: memref<1x128xf32, #tpu.memory_space<vmem>>, %arg4: memref<128x128xbf16, #tpu.memory_space<vmem>>, %arg5: memref<1x128xf32, #tpu.memory_space<vmem>>, %arg6: memref<8x128xf32, #tpu.memory_space<vmem>>) attributes {dimension_semantics = [#tpu.dimension_semantics<parallel>], iteration_bounds = array<i64: 2>, scalar_prefetch = 0 : i64, scratch_operands = 0 : i64, tpu.core_type = #tpu.core_type<tc>, window_params = [{transform_indices = @transform_0, window_bounds = array<i64: 8, 128>}, {pipeline_mode = #tpu.pipeline_mode<synchronous>, transform_indices = @transform_1, window_bounds = array<i64: 128, 128>}, {pipeline_mode = #tpu.pipeline_mode<synchronous>, transform_indices = @transform_2, window_bounds = array<i64: 1, 128>}, {pipeline_mode = #tpu.pipeline_mode<synchronous>, transform_indices = @transform_3, window_bounds = array<i64: 128, 128>}, {pipeline_mode = #tpu.pipeline_mode<synchronous>, transform_indices = @transform_4, window_bounds = array<i64: 1, 128>}, {transform_indices = @transform_5, window_bounds = array<i64: 8, 128>}]} {
    %c0 = arith.constant 0 : index
    %c0_0 = arith.constant 0 : index
    %0 = vector.load %arg1[%c0, %c0_0] : memref<8x128xf32, #tpu.memory_space<vmem>>, vector<8x128xf32>
    %1 = arith.truncf %0 : vector<8x128xf32> to vector<8x128xbf16>
    %c0_1 = arith.constant 0 : index
    %c0_2 = arith.constant 0 : index
    %2 = vector.load %arg2[%c0_1, %c0_2] : memref<128x128xbf16, #tpu.memory_space<vmem>>, vector<128x128xbf16>
    %cst = arith.constant dense<0.000000e+00> : vector<8x128xf32>
    %3 = tpu.matmul %1, %2, %cst {dimension_numbers = #tpu.dot_dimension_numbers<[1], [0], [0], [1], [0, 0, 1, 1], [], []>} : vector<8x128xbf16>, vector<128x128xbf16>, vector<8x128xf32> -> vector<8x128xf32>
    %c0_3 = arith.constant 0 : index
    %c0_4 = arith.constant 0 : index
    %4 = vector.load %arg3[%c0_3, %c0_4] : memref<1x128xf32, #tpu.memory_space<vmem>>, vector<1x128xf32>
    %5 = vector.broadcast %4 : vector<1x128xf32> to vector<8x128xf32>
    %6 = arith.addf %3, %5 : vector<8x128xf32>
    %cst_5 = arith.constant 0.000000e+00 : f32
    %7 = vector.broadcast %cst_5 : f32 to vector<8x128xf32>
    %8 = arith.maximumf %6, %7 : vector<8x128xf32>
    %9 = arith.truncf %8 : vector<8x128xf32> to vector<8x128xbf16>
    %c0_6 = arith.constant 0 : index
    %c0_7 = arith.constant 0 : index
    %10 = vector.load %arg4[%c0_6, %c0_7] : memref<128x128xbf16, #tpu.memory_space<vmem>>, vector<128x128xbf16>
    %cst_8 = arith.constant dense<0.000000e+00> : vector<8x128xf32>
    %11 = tpu.matmul %9, %10, %cst_8 {dimension_numbers = #tpu.dot_dimension_numbers<[1], [0], [0], [1], [0, 0, 1, 1], [], []>} : vector<8x128xbf16>, vector<128x128xbf16>, vector<8x128xf32> -> vector<8x128xf32>
    %c0_9 = arith.constant 0 : index
    %c0_10 = arith.constant 0 : index
    %12 = vector.load %arg5[%c0_9, %c0_10] : memref<1x128xf32, #tpu.memory_space<vmem>>, vector<1x128xf32>
    %13 = vector.broadcast %12 : vector<1x128xf32> to vector<8x128xf32>
    %14 = arith.addf %11, %13 : vector<8x128xf32>
    %c0_11 = arith.constant 0 : index
    %c0_12 = arith.constant 0 : index
    %15 = vector.load %arg6[%c0_11, %c0_12] : memref<8x128xf32, #tpu.memory_space<vmem>>, vector<8x128xf32>
    tpu.vector_store %arg6[%c0_11, %c0_12], %14 {strides = array<i32>} : memref<8x128xf32, #tpu.memory_space<vmem>>, vector<8x128xf32>,
    return
  }
  func.func @transform_0(%arg0: i32) -> (i32, i32) {
    %c0_i32 = arith.constant 0 : i32
    %c0_i32_0 = arith.constant 0 : i32
    return %arg0, %c0_i32 : i32, i32
  }
  func.func @transform_1(%arg0: i32) -> (i32, i32) {
    %c0_i32 = arith.constant 0 : i32
    %c0_i32_0 = arith.constant 0 : i32
    %c0_i32_1 = arith.constant 0 : i32
    return %c0_i32, %c0_i32_0 : i32, i32
  }
  func.func @transform_2(%arg0: i32) -> (i32, i32) {
    %c0_i32 = arith.constant 0 : i32
    %c0_i32_0 = arith.constant 0 : i32
    %c0_i32_1 = arith.constant 0 : i32
    return %c0_i32, %c0_i32_0 : i32, i32
  }
  func.func @transform_3(%arg0: i32) -> (i32, i32) {
    %c0_i32 = arith.constant 0 : i32
    %c0_i32_0 = arith.constant 0 : i32
    %c0_i32_1 = arith.constant 0 : i32
    return %c0_i32, %c0_i32_0 : i32, i32
  }
  func.func @transform_4(%arg0: i32) -> (i32, i32) {
    %c0_i32 = arith.constant 0 : i32
    %c0_i32_0 = arith.constant 0 : i32
    %c0_i32_1 = arith.constant 0 : i32
    return %c0_i32, %c0_i32_0 : i32, i32
  }
  func.func @transform_5(%arg0: i32) -> (i32, i32) {
    %c0_i32 = arith.constant 0 : i32
    %c0_i32_0 = arith.constant 0 : i32
    return %arg0, %c0_i32 : i32, i32
  }
}

</mosaic_0001>

<bundles_post_ra>
// kernel: resnet_block_forward.1
= control target key start
LH: loop header
LB: loop body
LE: loop exit
PB: predicated region body
PF: predicated region fallthrough
CT: control target
= control target key end

     0   :  { %10 = vsyncpa [#allocation3], 0  ;;  %s912_s0 = inlined_call_operand.vmem [shape: f32[16,128], index: 0, kind: input, shape index: {}]   ;;  %s913_s1 = inlined_call_operand.vmem [shape: bf16[128,128], index: 1, kind: input, shape index: {}]   ;;  %s914_s2 = inlined_call_operand.vmem [shape: f32[1,128], index: 2, kind: input, shape index: {}]   ;;  %s915_s3 = inlined_call_operand.vmem [shape: bf16[128,128], index: 3, kind: input, shape index: {}]   ;;  %s916_s4 = inlined_call_operand.vmem [shape: f32[1,128], index: 4, kind: input, shape index: {}]   ;;  %s917_s5 = inlined_call_operand.hbm [shape: f32[16,128], index: 5, kind: output, shape index: {}]  }
   0x1   :  { %12 = vsyncpa [#allocation3 + $0x1], 0  ;;  %s759_s18 = smov 0   ;;  %s761_s19 = smov 0  }
   0x2   :  { %s763_s20 = smov 0   ;;  %s765_s21 = smov 0  }
   0x3 LB: > { %s780_s22 = sadd.s32 4294967295, %s724_s21   ;;  %s521_s23 = sadd.s32 4294967294, %s724_s21   ;;  %s724_s21 = sphi %s765_s21, %s923_s21   ;;  %s720_s20 = sphi %s763_s20, %s922_s20   ;;  %s716_s19 = sphi %s761_s19, %s921_s19   ;;  %s712_s18 = sphi %s759_s18, %s920_s18  }
   0x4   : > { %s784_s24 = sadd.s32 1, %s724_s21   ;;  %s135_s25 = sadd.s32 1, %s720_s20 }
   0x5   : > { %s132_s26 = ssub.s32 %s724_s21, %s784_s24  ;;  %p145_p0 = scmp.ne.s32.totalorder %s720_s20, %s716_s19 }
   0x6   : > { %p133_p1 = scmp.eq.s32.totalorder %s132_s26, 0  ;;  %p146_p2 = scmp.eq.s32.totalorder %s780_s22, 1 }
   0x7   : > { %p151_p3 = scmp.ne.s32.totalorder %s716_s19, %s712_s18  ;;  %p152_p4 = scmp.eq.s32.totalorder %s521_s23, 1 }
   0x8   : > { %s795_s27 = scalar_select %p133_p1, %s720_s20, %s135_s25  }
   0x9   : > { %p797_p5 = por %p146_p2, %p145_p0  ;;  %p801_p6 = por %p152_p4, %p151_p3 }
   0xa   : > { %p524_p7 = scmp.ge.s32.totalorder %s724_s21, 1  ;;  %p189_p8 = scmp.lt.s32.totalorder %s724_s21, 3 }
   0xc   : > { %p190_p9 = pnand %p524_p7, %p189_p8 }
   0xd   : > { %p216_p10 = scmp.lt.s32.totalorder (!%p190_p9), %s780_s22, 1  ;;  %s213_s12 = sand.u32 (!%p190_p9), 1, %s716_s19  }
   0xe   : > { %193 = sbr.rel (%p190_p9) target bundleno = 460 (0x1cc), region = 40  ;;  %s525_s13 = sshll.u32 (!%p190_p9), %s213_s12, 3 }
   0xf   : > { %s546_s16 = sshll.u32 (!%p190_p9), %s780_s22, 7  ;;  %s215_s17 = scalar_lea.vmem (!%p190_p9), [#allocation2], %s525_s13 }
  0x10   : > { %s462_s23 = sshll.u32 (!%p190_p9), %s215_s17, 4  ;;  %s449_s6 = scalar_lea.sflag (!%p190_p9), [#allocation3], %s213_s12  ;;  %s873_s23 = int_to_ptr.vmem [resolvable:$true] %s462_s23 }
  0x11   : > { %s664_s7 = scalar_lea.vmem (!%p190_p9), %s873_s23, 128 }
  0x12   : > { %p665_p11 = scmp.ne.s32.totalorder (!%p190_p9), %s873_s23, %s664_s7 }
  0x13   : > { %v648_v0 = vld [vmem:[%s913_s1 + $0x38] sm:$0xff]   ;;  %v726_v1 = vmov 0.0   ;;  %v649_v2 = vld [vmem:[%s913_s1 + $0x30] sm:$0xff]   ;;  %vm727_vm0 = vmmov 0   ;;  %v650_v3 = vld [vmem:[%s913_s1 + $0x28] sm:$0xff]   ;;  %s217_s30 = scalar_select %p216_p10, %s780_s22, 1 }
  0x14   : > { %567 = vmatprep.subr.bf16.mxu0 %v726_v1  ;;  %587 = vmatprep.subr.bf16.mxu1 %v726_v1  ;;  %v656_v4 = vld [vmem:[%s915_s3 + $0x38] sm:$0xff]   ;;  %v651_v5 = vld [vmem:[%s913_s1 + $0x20] sm:$0xff]   ;;  %v657_v6 = vld [vmem:[%s915_s3 + $0x30] sm:$0xff]   ;;  %p666_p12 = pnand %p665_p11, %p797_p5  ;;  %s728_s22 = smov [#allocation2]  }
  0x15   : > { %568 = vmatpush3.bf16.msra.mxu0 %v648_v0  ;;  %583 = vmatprep.mubr.msk.bf16.mxu0 %vm727_vm0, %v726_v1  ;;  %v652_v7 = vld [vmem:[%s913_s1 + $0x18] sm:$0xff]   ;;  %v658_v8 = vld [vmem:[%s915_s3 + $0x28] sm:$0xff]   ;;  %v653_v9 = vld [vmem:[%s913_s1 + $0x10] sm:$0xff]   ;;  %s526_s10 = sshll.u32 %s217_s30, 3  ;;  %s871_s30 = scalar_lea.hbm %s917_s5, %s546_s16 }
  0x16   : > { %569 = vmatprep.subr.bf16.mxu0 %v726_v1  ;;  %603 = vmatprep.mubr.msk.bf16.mxu1 %vm727_vm0, %v726_v1  ;;  %v659_v10 = vld [vmem:[%s915_s3 + $0x20] sm:$0xff]   ;;  %v654_v11 = vld [vmem:[%s913_s1 + $0x8] sm:$0xff]   ;;  %s219_s15 = scalar_lea.vmem %s912_s0, %s526_s10  ;;  %v660_v12 = vld [vmem:[%s915_s3 + $0x18] sm:$0xff]   ;;  %p667_p13 = pneg %p666_p12 }
  0x17   : > { %588 = vmatpush3.bf16.msra.mxu1 %v656_v4  ;;  %v655_v13 = vld [vmem:[%s913_s1] sm:$0xff]   ;;  %v661_v15 = vld [vmem:[%s915_s3 + $0x10] sm:$0xff]   ;;  %v662_v17 = vld [vmem:[%s915_s3 + $0x8] sm:$0xff]   ;;  %s668_s8 = sshll.u32 %s728_s22, 4  ;;  %s669_s8 = int_to_ptr.vmem [resolvable:$false] %s668_s8 }
  0x18   : > { %589 = vmatprep.subr.bf16.mxu1 %v726_v1  ;;  %v221_v14 = vld [vmem:[%s219_s15] sm:$0xff]  ;;  %s670_s9 = scalar_lea.vmem %s669_s8, 256  ;;  %p671_p0 = scmp.lt.s32.totalorder %s873_s23, %s669_s8 }
  0x19   : > { %570 = vmatpush3.bf16.msra.mxu0 %v649_v2  ;;  %v222_v16 = vpack.c.bf16 %v221_v14, %v221_v14  ;;  %v663_v18 = vld [vmem:[%s915_s3] sm:$0xff]   ;;  %p672_p1 = scmp.lt.s32.totalorder %s670_s9, %s664_s7 }
  0x1a   : > { %571 = vmatprep.subr.bf16.mxu0 %v726_v1  ;;  %v527_v19 = vld [vmem:[%s914_s2] ss:$0 sm:$0xff] }
  0x1b   : > { %590 = vmatpush3.bf16.msra.mxu1 %v657_v6  ;;  %v536_v27 = vld [vmem:[%s916_s4] ss:$0 sm:$0xff]  ;;  %p673_p2 = por %p672_p1, %p671_p0 }
  0x1c   : > { %591 = vmatprep.subr.bf16.mxu1 %v726_v1 }
  0x1d   : > { %572 = vmatpush3.bf16.msra.mxu0 %v650_v3  ;;  %p674_p3 = pnand %p673_p2, %p667_p13 }
  0x1e   : > { %573 = vmatprep.subr.bf16.mxu0 %v726_v1 }
  0x1f   : > { %592 = vmatpush3.bf16.msra.mxu1 %v658_v8 }
  0x20   : > { %593 = vmatprep.subr.bf16.mxu1 %v726_v1 }
  0x21   : > { %574 = vmatpush3.bf16.msra.mxu0 %v651_v5 }
  0x22   : > { %575 = vmatprep.subr.bf16.mxu0 %v726_v1 }
  0x23   : > { %594 = vmatpush3.bf16.msra.mxu1 %v659_v10 }
  0x24   : > { %595 = vmatprep.subr.bf16.mxu1 %v726_v1 }
  0x25   : > { %576 = vmatpush3.bf16.msra.mxu0 %v652_v7 }
  0x26   : > { %577 = vmatprep.subr.bf16.mxu0 %v726_v1 }
  0x27   : > { %596 = vmatpush3.bf16.msra.mxu1 %v660_v12 }
  0x28   : > { %597 = vmatprep.subr.bf16.mxu1 %v726_v1 }
  0x29   : > { %578 = vmatpush3.bf16.msra.mxu0 %v653_v9 }
  0x2a   : > { %579 = vmatprep.subr.bf16.mxu0 %v726_v1 }
  0x2b   : > { %598 = vmatpush3.bf16.msra.mxu1 %v661_v15 }
  0x2c   : > { %599 = vmatprep.subr.bf16.mxu1 %v726_v1 }
  0x2d   : > { %580 = vmatpush3.bf16.msra.mxu0 %v654_v11 }
  0x2e   : > { %581 = vmatprep.subr.bf16.mxu0 %v726_v1 }
  0x2f   : > { %600 = vmatpush3.bf16.msra.mxu1 %v662_v17 }
  0x30   : > { %601 = vmatprep.subr.bf16.mxu1 %v726_v1 }
  0x31   : > { %582 = vmatpush3.bf16.msra.mxu0 %v655_v13 }
  0x33   : > { %602 = vmatpush3.bf16.msra.mxu1 %v663_v18 }
  0x34   : > { %584 = vmatmul.mubr.bf16.vlgmr.msra.gmra.mxu0 %v222_v16 }
  0xf4   : > { %v328_v20 = vpop.f32.mrf.mxu0 }
  0xf5   : > { %v329_v21 = vadd.f32 %v527_v19, %v328_v20 }
  0xf6   : > { %v585_v22 = vpop.f32.mrf.mxu0 }
  0xf7   : > { %v334_v23 = vmax.f32 %v329_v21, 0.0 }
  0xf8   : > { %v331_v24 = vpop.f32.mrf.mxu0 }
  0xf9   : > { %v335_v25 = vpack.c.bf16 %v334_v23, %v334_v23 }
  0xfa   : > { %v586_v26 = vpop.f32.mrf.mxu0 }
  0xfb   : > { %604 = vmatmul.mubr.bf16.vlgmr.msra.gmra.mxu1 %v335_v25 }
 0x1bb   : > { %v441_v28 = vpop.f32.mrf.mxu1 }
 0x1bc   : > { %v442_v29 = vadd.f32 %v536_v27, %v441_v28 }
 0x1bd   : > { %v605_v30 = vpop.f32.mrf.mxu1 }
 0x1be   : > { %447 = vst [vmem:[%s215_s17] sm:$0xff] %v442_v29 }
 0x1bf   : > { %v444_v31 = vpop.f32.mrf.mxu1 }
 0x1c0   : > { %677 = shalt.err (!%p674_p3)
}
 0x1c1   : > { %s678_s10 = scalar_lea.hbm %s871_s30, 128  ;;  %s682_s13 = scalar_lea.hbm %s917_s5, 256 }
 0x1c2   : > { %p679_p4 = scmp.ne.s32.totalorder %s871_s30, %s678_s10  ;;  %p683_p9 = scmp.lt.s32.totalorder %s871_s30, %s917_s5 }
 0x1c3   : > { %p684_p10 = scmp.lt.s32.totalorder %s682_s13, %s678_s10 }
 0x1c4   : > { %p680_p7 = pnand %p679_p4, %p797_p5 }
 0x1c5   : > { %p685_p11 = por %p684_p10, %p683_p9 }
 0x1c6   : > { %p681_p8 = pneg %p680_p7 }
 0x1c8   : > { %p686_p12 = pnand %p685_p11, %p681_p8 }
 0x1ca   : > { %689 = shalt.err (!%p686_p12)
}
 0x1cb   : > { %607 = dma.vmem_to_hbm [thread:$0]  (%p797_p5), %s873_s23, 128, %s871_s30, %s449_s6   ;;  %v606_v32 = vpop.f32.mrf.mxu1 }
 0x1cc PF: > { %p613_p13 = scmp.ge.s32.totalorder %s724_s21, 2  ;;  %s474_s16 = sand.u32 1, %s712_s18  }
 0x1cd   : > { %s475_s17 = scalar_lea.sflag [#allocation3], %s474_s16 }
 0x1ce   : > { %p610_p0 = pnand %p613_p13, %p801_p6 }
 0x1d0   : > { %p611_p1 = pneg %p610_p0 }
 0x1d2   : > { %707 = dma.done.wait (%p611_p1), %s475_s17, 128  }
 0x1d3   : > { %709 = vsyncadd (%p611_p1), %s475_s17, 4294967168  ;;  %p15_p2 = scmp.ge.s32.totalorder %s784_s24, 4   ;;  %s920_s18 = smov %s716_s19 }
 0x1d4   : > { %s921_s19 = smov %s720_s20  ;;  %s922_s20 = smov %s795_s27 }
 0x1d5   : > { %s923_s21 = smov %s784_s24  ;;  %17 = sbr.rel (!%p15_p2) target bundleno = 3 (0x3), region = 75 }
 0x1da   :  { %480 = vsyncpa [#allocation3], 1 }
 0x1db   :  { %482 = vsyncpa [#allocation3 + $0x1], 1 }

</bundles_post_ra>
